<compile_context>
chip_gen: v7x
topology: tpu7x:2x2x1
jax: 0.10.0
libtpu: 0.0.40
codegen_flags: <defaults>
</compile_context>

<pallas_src>
import functools

import jax
import jax.numpy as jnp
from jax.experimental import pallas as pl
from jax.experimental.pallas import tpu as pltpu


# Conservative live-VMEM budget for the weight-stationary matmuls (v7x has
# 64 MiB physical / 32 MiB scoped default; v5e scoped default is only 16 MiB).
_WS_VMEM_BUDGET = 36 * 1024 * 1024
_WS_VMEM_LIMIT = 48 * 1024 * 1024


def _choose_tile(dim, target, aligns=(256, 128, 16, 8)):
    """Largest multiple of one of `aligns` that divides `dim` and is <= target;
    falls back to the whole axis for small/awkward dims."""
    if dim <= target:
        return dim
    for align in aligns:
        t = (target // align) * align
        while t >= align:
            if dim % t == 0:
                return t
            t -= align
    return dim


def _vmem_limit_for(ws_bytes):
    # Only override the compiler's default scoped-VMEM limit when the resident
    # working set actually needs it (demo-sized kernels stay on defaults).
    return _WS_VMEM_LIMIT if ws_bytes > (12 * 1024 * 1024) else None


_GELU_C = 0.7978845608028654  # sqrt(2/pi)


def _apply_activation(y, activation):
    if activation == "gelu":
        # tanh-approx GELU: transcendental rides the EUP slot instead of an erf
        # polynomial on the VALU (FFN1 epilogue was flagged as VALU-bound on
        # v6e/v7x); deviation from exact erf GELU is ~1e-3.
        return 0.5 * y * (1.0 + jnp.tanh(_GELU_C * (y + 0.044715 * (y * y * y))))
    if activation == "tanh":
        return jnp.tanh(y)
    return y


# ----------------------------------------------------------------------------
# Linear: y = act(x @ w + b)   — weight-stationary, with a 3-D tiled fallback
# ----------------------------------------------------------------------------
def _linear_ws_kernel(x_ref, w_ref, b_ref, o_ref, *, activation):
    # Full weight resident in VMEM; single M-tile matmul + fused f32 epilogue.
    y = jnp.dot(x_ref[...], w_ref[...], preferred_element_type=jnp.float32)
    y = _apply_activation(y + b_ref[...], activation)
    o_ref[...] = y.astype(o_ref.dtype)


def _linear_tiled_kernel(x_ref, w_ref, b_ref, o_ref, acc_ref, *, activation):
    @pl.when(pl.program_id(2) == 0)
    def _():
        acc_ref[...] = jnp.zeros_like(acc_ref)

    acc_ref[...] += jnp.dot(x_ref[...], w_ref[...],
                            preferred_element_type=jnp.float32)

    @pl.when(pl.program_id(2) == pl.num_programs(2) - 1)
    def _():
        y = _apply_activation(acc_ref[...] + b_ref[...], activation)
        o_ref[...] = y.astype(o_ref.dtype)


def pallas_linear(x, w, b, activation="none", out_dtype=jnp.bfloat16,
                  compute_dtype=jnp.bfloat16, tm=512, tn=512, tk=512):
    """x: [M,K], w: [K,N] (pre-transposed), b: [N] -> [M,N].

    Weight-stationary when the weight fits the VMEM budget: grid over M only,
    so the weight is read from HBM exactly once.  Keep M/tm >= 2 on real
    workloads so the parallel M axis feeds both v7x TensorCores."""
    M, K = x.shape
    N = w.shape[1]
    in_b = jnp.dtype(compute_dtype).itemsize
    out_b = jnp.dtype(out_dtype).itemsize

    x = x.astype(compute_dtype)
    w = w.astype(compute_dtype)
    b2 = b.astype(jnp.float32).reshape(1, N)

    tm_ws = _choose_tile(M, tm, (16, 8))          # 16: bf16 sublane packing
    ws_bytes = (K * N * in_b                      # resident weight
                + 2 * tm_ws * K * in_b            # double-buffered x tile
                + 2 * tm_ws * N * out_b           # double-buffered out tile
                + N * 4)                          # bias
    if ws_bytes <= _WS_VMEM_BUDGET:
        return pl.pallas_call(
            functools.partial(_linear_ws_kernel, activation=activation),
            out_shape=jax.ShapeDtypeStruct((M, N), out_dtype),
            grid_spec=pltpu.PrefetchScalarGridSpec(
                num_scalar_prefetch=0,
                grid=(M // tm_ws,),
                in_specs=[
                    pl.BlockSpec((tm_ws, K), lambda i: (i, 0)),
                    pl.BlockSpec((K, N), lambda i: (0, 0)),   # weight-stationary
                    pl.BlockSpec((1, N), lambda i: (0, 0)),
                ],
                out_specs=pl.BlockSpec((tm_ws, N), lambda i: (i, 0))),
            compiler_params=pltpu.CompilerParams(
                dimension_semantics=("parallel",),
                vmem_limit_bytes=_vmem_limit_for(ws_bytes)),
        )(x, w, b2)

    # Fallback for weights too large to keep resident: larger M tiles and
    # 256-aligned tn/tk (2x256^2 MXU on v6e/v7x), f32 accumulator, K axis last.
    tn = _choose_tile(N, tn, (256, 128))
    tk = _choose_tile(K, tk, (256, 128))
    return pl.pallas_call(
        functools.partial(_linear_tiled_kernel, activation=activation),
        out_shape=jax.ShapeDtypeStruct((M, N), out_dtype),
        grid_spec=pltpu.PrefetchScalarGridSpec(
            num_scalar_prefetch=0,
            grid=(M // tm_ws, N // tn, K // tk),
            in_specs=[
                pl.BlockSpec((tm_ws, tk), lambda i, j, k: (i, k)),
                pl.BlockSpec((tk, tn), lambda i, j, k: (k, j)),
                pl.BlockSpec((1, tn), lambda i, j, k: (0, j)),
            ],
            out_specs=pl.BlockSpec((tm_ws, tn), lambda i, j, k: (i, j)),
            scratch_shapes=[pltpu.VMEM((tm_ws, tn), jnp.float32)]),
        compiler_params=pltpu.CompilerParams(
            dimension_semantics=("parallel", "parallel", "arbitrary")),
    )(x, w, b2)


def pallas_head_linear(x, w, b, out_dtype=jnp.float32):
    """Small-N classifier head in f32 (matches the PyTorch trainable heads):
    pad N up to the 128-lane width so stores stay lane-dense, then slice."""
    N = w.shape[1]
    pad = (-N) % 128
    if pad:
        w = jnp.pad(w, ((0, 0), (0, pad)))
        b = jnp.pad(b, ((0, pad),))
    y = pallas_linear(x, w, b, out_dtype=out_dtype, compute_dtype=jnp.float32)
    return y[:, :N]


# ----------------------------------------------------------------------------
# Linear fused with residual add + LayerNorm
#   out = LayerNorm((x @ w + b) + residual) * gamma + beta
# (N = H kept whole per block so LN statistics see the full row.)
# ----------------------------------------------------------------------------
def _linear_add_ln_ws_kernel(x_ref, w_ref, b_ref, r_ref, g_ref, bb_ref, o_ref,
                             *, eps):
    h = (jnp.dot(x_ref[...], w_ref[...], preferred_element_type=jnp.float32)
         + b_ref[...] + r_ref[...].astype(jnp.float32))
    mu = jnp.mean(h, axis=-1, keepdims=True)
    c = h - mu
    var = jnp.mean(c * c, axis=-1, keepdims=True)
    o_ref[...] = (c * jax.lax.rsqrt(var + eps) * g_ref[...]
                  + bb_ref[...]).astype(o_ref.dtype)


def _linear_add_ln_tiled_kernel(x_ref, w_ref, b_ref, r_ref, g_ref, bb_ref,
                                o_ref, acc_ref, *, eps):
    k = pl.program_id(1)

    @pl.when(k == 0)
    def _():
        acc_ref[...] = jnp.zeros_like(acc_ref)

    acc_ref[...] += jnp.dot(x_ref[...], w_ref[...],
                            preferred_element_type=jnp.float32)

    @pl.when(k == pl.num_programs(1) - 1)
    def _():
        h = acc_ref[...] + b_ref[...] + r_ref[...].astype(jnp.float32)
        mu = jnp.mean(h, axis=-1, keepdims=True)
        c = h - mu
        var = jnp.mean(c * c, axis=-1, keepdims=True)
        o_ref[...] = (c * jax.lax.rsqrt(var + eps) * g_ref[...]
                      + bb_ref[...]).astype(o_ref.dtype)


def pallas_linear_add_ln(x, w, b, residual, gamma, beta, eps=1e-12,
                         out_dtype=jnp.bfloat16, tm=512, tk=512):
    M, K = x.shape
    N = w.shape[1]

    x = x.astype(jnp.bfloat16)
    w = w.astype(jnp.bfloat16)
    residual = residual.astype(jnp.bfloat16)
    b2 = b.astype(jnp.float32).reshape(1, N)
    g2 = gamma.astype(jnp.float32).reshape(1, N)
    bb2 = beta.astype(jnp.float32).reshape(1, N)

    tm_ws = _choose_tile(M, tm, (16, 8))
    out_b = jnp.dtype(out_dtype).itemsize
    ws_bytes = (K * N * 2 + 2 * tm_ws * K * 2 + 2 * tm_ws * N * 2
                + 2 * tm_ws * N * out_b + 3 * N * 4)
    if ws_bytes <= _WS_VMEM_BUDGET:
        return pl.pallas_call(
            functools.partial(_linear_add_ln_ws_kernel, eps=eps),
            out_shape=jax.ShapeDtypeStruct((M, N), out_dtype),
            grid_spec=pltpu.PrefetchScalarGridSpec(
                num_scalar_prefetch=0,
                grid=(M // tm_ws,),
                in_specs=[
                    pl.BlockSpec((tm_ws, K), lambda i: (i, 0)),
                    pl.BlockSpec((K, N), lambda i: (0, 0)),   # weight-stationary
                    pl.BlockSpec((1, N), lambda i: (0, 0)),
                    pl.BlockSpec((tm_ws, N), lambda i: (i, 0)),
                    pl.BlockSpec((1, N), lambda i: (0, 0)),
                    pl.BlockSpec((1, N), lambda i: (0, 0)),
                ],
                out_specs=pl.BlockSpec((tm_ws, N), lambda i: (i, 0))),
            compiler_params=pltpu.CompilerParams(
                dimension_semantics=("parallel",),
                vmem_limit_bytes=_vmem_limit_for(ws_bytes)),
        )(x, w, b2, residual, g2, bb2)

    tk = _choose_tile(K, tk, (256, 128))
    return pl.pallas_call(
        functools.partial(_linear_add_ln_tiled_kernel, eps=eps),
        out_shape=jax.ShapeDtypeStruct((M, N), out_dtype),
        grid_spec=pltpu.PrefetchScalarGridSpec(
            num_scalar_prefetch=0,
            grid=(M // tm_ws, K // tk),
            in_specs=[
                pl.BlockSpec((tm_ws, tk), lambda i, k: (i, k)),
                pl.BlockSpec((tk, N), lambda i, k: (k, 0)),
                pl.BlockSpec((1, N), lambda i, k: (0, 0)),
                pl.BlockSpec((tm_ws, N), lambda i, k: (i, 0)),
                pl.BlockSpec((1, N), lambda i, k: (0, 0)),
                pl.BlockSpec((1, N), lambda i, k: (0, 0)),
            ],
            out_specs=pl.BlockSpec((tm_ws, N), lambda i, k: (i, 0)),
            scratch_shapes=[pltpu.VMEM((tm_ws, N), jnp.float32)]),
        compiler_params=pltpu.CompilerParams(
            dimension_semantics=("parallel", "arbitrary")),
    )(x, w, b2, residual, g2, bb2)


# ----------------------------------------------------------------------------
# Embeddings: fused (word + position + type) sum + LayerNorm
# ----------------------------------------------------------------------------
def _emb_ln_kernel(we_ref, te_ref, pe_ref, g_ref, b_ref, o_ref, *, eps):
    h = (we_ref[0].astype(jnp.float32) + te_ref[0].astype(jnp.float32)
         + pe_ref[...].astype(jnp.float32))
    mu = jnp.mean(h, axis=-1, keepdims=True)
    c = h - mu
    var = jnp.mean(c * c, axis=-1, keepdims=True)
    o_ref[0] = (c * jax.lax.rsqrt(var + eps) * g_ref[...]
                + b_ref[...]).astype(o_ref.dtype)


def pallas_embedding_layernorm(we, te, pe, gamma, beta, eps=1e-12,
                               out_dtype=jnp.bfloat16, ts=512):
    """we/te: [B,S,H] gathered word/type embeddings (bf16), pe: [S,H] position
    embeddings.  The three-way sum happens in-kernel in f32, so no f32 [BS,H]
    sum is ever materialized in HBM."""
    B, S, H = we.shape
    ts = _choose_tile(S, ts, (16, 8))
    return pl.pallas_call(
        functools.partial(_emb_ln_kernel, eps=eps),
        out_shape=jax.ShapeDtypeStruct((B, S, H), out_dtype),
        grid_spec=pltpu.PrefetchScalarGridSpec(
            num_scalar_prefetch=0,
            grid=(B, S // ts),
            in_specs=[
                pl.BlockSpec((1, ts, H), lambda b, s: (b, s, 0)),
                pl.BlockSpec((1, ts, H), lambda b, s: (b, s, 0)),
                pl.BlockSpec((ts, H), lambda b, s: (s, 0)),
                pl.BlockSpec((1, H), lambda b, s: (0, 0)),
                pl.BlockSpec((1, H), lambda b, s: (0, 0)),
            ],
            out_specs=pl.BlockSpec((1, ts, H), lambda b, s: (b, s, 0))),
        compiler_params=pltpu.CompilerParams(
            dimension_semantics=("parallel", "parallel")),
    )(we, te, pe, gamma.astype(jnp.float32).reshape(1, H),
      beta.astype(jnp.float32).reshape(1, H))


# ----------------------------------------------------------------------------
# Self-attention: grid over (batch, head-group); head groups are 128-lane wide
# slices of the fused [B, S, 3H] QKV slab (2 heads at BERT-base).
# ----------------------------------------------------------------------------
def _softmax_exp_dtype():
    """bf16 exp doubles EUP throughput on v6e/v7x; v5e and older have no bf16
    EUP, so keep the softmax exp in f32 there."""
    try:
        kind = jax.devices()[0].device_kind.lower()
    except Exception:
        return jnp.float32
    if any(v in kind for v in ("v2", "v3", "v4", "v5")):
        return jnp.float32
    return jnp.bfloat16


def _mha_block(q, k, v, mask, n_heads, dh, exp_dtype, out_dtype):
    """Attention over the heads present in this block.  The 1/sqrt(dh) scale
    is folded into the frozen W_q at init, and softmax normalization is
    deferred to the [S, dh] context instead of the [S, S] probabilities."""
    outs = []
    for h in range(n_heads):               # small static unroll (heads/block)
        qh = q[:, h * dh:(h + 1) * dh]
        kh = k[:, h * dh:(h + 1) * dh]
        vh = v[:, h * dh:(h + 1) * dh]
        s = jax.lax.dot_general(qh, kh, (((1,), (1,)), ((), ())),
                                preferred_element_type=jnp.float32)
        s = s + mask                        # broadcast [1,S] -> [S,S]
        m = jnp.max(s, axis=-1, keepdims=True)
        p = jnp.exp((s - m).astype(exp_dtype))
        denom = jnp.sum(p.astype(jnp.float32), axis=-1, keepdims=True)
        ctx = jnp.dot(p.astype(vh.dtype), vh,
                      preferred_element_type=jnp.float32)
        outs.append(ctx / denom)            # exact normalization on [S, dh]
    return jnp.concatenate(outs, axis=-1).astype(out_dtype)


def _attention_group_kernel(q_ref, k_ref, v_ref, mask_ref, o_ref, *,
                            heads, dh, exp_dtype):
    o_ref[0] = _mha_block(q_ref[0], k_ref[0], v_ref[0], mask_ref[0],
                          heads, dh, exp_dtype, o_ref.dtype)


def _attention_full_kernel(qkv_ref, mask_ref, o_ref, *, n_heads, dh, exp_dtype):
    H = n_heads * dh
    qkv = qkv_ref[0]
    o_ref[0] = _mha_block(qkv[:, :H], qkv[:, H:2 * H], qkv[:, 2 * H:],
                          mask_ref[0], n_heads, dh, exp_dtype, o_ref.dtype)


def pallas_attention(qkv, addmask, *, n_heads):
    """qkv: [B, S, 3H] bf16 (fused QKV projection), addmask: [B, 1, S] f32
    additive mask -> [B, S, H] bf16 context (lane-dense, no HBM transposes)."""
    B, S, H3 = qkv.shape
    H = H3 // 3
    dh = H // n_heads
    exp_dtype = _softmax_exp_dtype()

    # Pick a head-group width that is a multiple of 128 lanes so each grid step
    # DMAs only those heads' Q/K/V and the [S,S] live intermediates are bounded.
    hb = None
    for cand in (1, 2, 4, 8, 16):
        if n_heads % cand == 0 and (cand * dh) % 128 == 0:
            hb = cand
            break

    if hb is not None:
        n_blk = n_heads // hb
        wb = hb * dh
        return pl.pallas_call(
            functools.partial(_attention_group_kernel, heads=hb, dh=dh,
                              exp_dtype=exp_dtype),
            out_shape=jax.ShapeDtypeStruct((B, S, H), jnp.bfloat16),
            grid_spec=pltpu.PrefetchScalarGridSpec(
                num_scalar_prefetch=0,
                grid=(B, n_blk),
                in_specs=[
                    pl.BlockSpec((1, S, wb), lambda b, g: (b, 0, g)),
                    pl.BlockSpec((1, S, wb), lambda b, g: (b, 0, n_blk + g)),
                    pl.BlockSpec((1, S, wb), lambda b, g: (b, 0, 2 * n_blk + g)),
                    pl.BlockSpec((1, 1, S), lambda b, g: (b, 0, 0)),
                ],
                out_specs=pl.BlockSpec((1, S, wb), lambda b, g: (b, 0, g))),
            compiler_params=pltpu.CompilerParams(
                dimension_semantics=("parallel", "parallel")),
        )(qkv, qkv, qkv, addmask)

    # Fallback (tiny configs whose head groups can't reach 128 lanes): whole
    # per-batch QKV block in VMEM, small static unroll over heads.
    # TODO(synk): for very long sequences, tile the query axis flash-style with
    # an online-softmax accumulator; at BERT sizes the per-group block fits VMEM.
    return pl.pallas_call(
        functools.partial(_attention_full_kernel, n_heads=n_heads, dh=dh,
                          exp_dtype=exp_dtype),
        out_shape=jax.ShapeDtypeStruct((B, S, H), jnp.bfloat16),
        grid_spec=pltpu.PrefetchScalarGridSpec(
            num_scalar_prefetch=0,
            grid=(B,),
            in_specs=[
                pl.BlockSpec((1, S, H3), lambda b: (b, 0, 0)),
                pl.BlockSpec((1, 1, S), lambda b: (b, 0, 0)),
            ],
            out_specs=pl.BlockSpec((1, S, H), lambda b: (b, 0, 0))),
        compiler_params=pltpu.CompilerParams(
            dimension_semantics=("parallel",)),
    )(qkv, addmask)


# ----------------------------------------------------------------------------
# Deterministic parameter init (synthetic, stands in for bert-base-cased)
# ----------------------------------------------------------------------------
def init_params(key, *, vocab, max_pos, type_vocab, hidden, n_layers, n_heads,
                intermediate, num_intent_labels, num_slot_labels, max_intents):
    def dense(k, shape, std=0.02):
        return jax.random.normal(k, shape, dtype=jnp.float32) * std

    keys = jax.random.split(key, 8 + n_layers)
    bf = jnp.bfloat16
    p = {
        # frozen encoder weights stored in bf16 (MXU + halved HBM traffic)
        "word_emb": dense(keys[0], (vocab, hidden)).astype(bf),
        "pos_emb": dense(keys[1], (max_pos, hidden)).astype(bf),
        "type_emb": dense(keys[2], (type_vocab, hidden)).astype(bf),
        "emb_ln_g": jnp.ones((hidden,), jnp.float32),
        "emb_ln_b": jnp.zeros((hidden,), jnp.float32),
        # pooler + trainable heads stay f32 (matches the PyTorch module)
        "pooler_w": dense(keys[3], (hidden, hidden)),
        "pooler_b": jnp.zeros((hidden,), jnp.float32),
        "ic_w": dense(keys[4], (hidden, max_intents)),
        "ic_b": jnp.zeros((max_intents,), jnp.float32),
        "icls_w": dense(keys[5], (hidden, num_intent_labels)),
        "icls_b": jnp.zeros((num_intent_labels,), jnp.float32),
        "slot_w": dense(keys[6], (hidden, num_slot_labels)),
        "slot_b": jnp.zeros((num_slot_labels,), jnp.float32),
        "layers": [],
    }
    # Fold the 1/sqrt(Dh) attention scale into the frozen W_q (and b_q, zero
    # here) so the attention kernel never scales an [S,S] matrix.
    scale = 1.0 / float(hidden // n_heads) ** 0.5
    for li in range(n_layers):
        lk = jax.random.split(keys[8 + li], 6)
        wq = dense(lk[0], (hidden, hidden)) * scale
        wk = dense(lk[1], (hidden, hidden))
        wv = dense(lk[2], (hidden, hidden))
        p["layers"].append({
            "w_qkv": jnp.concatenate([wq, wk, wv], axis=1).astype(bf),  # [H,3H]
            "b_qkv": jnp.zeros((3 * hidden,), jnp.float32),
            "wo": dense(lk[3], (hidden, hidden)).astype(bf),
            "bo": jnp.zeros((hidden,), jnp.float32),
            "ln1_g": jnp.ones((hidden,), jnp.float32),
            "ln1_b": jnp.zeros((hidden,), jnp.float32),
            "wi": dense(lk[4], (hidden, intermediate)).astype(bf),
            "bi": jnp.zeros((intermediate,), jnp.float32),
            "wo2": dense(lk[5], (intermediate, hidden)).astype(bf),
            "bo2": jnp.zeros((hidden,), jnp.float32),
            "ln2_g": jnp.ones((hidden,), jnp.float32),
            "ln2_b": jnp.zeros((hidden,), jnp.float32),
        })
    return p


# ----------------------------------------------------------------------------
# BertFreeze forward
# ----------------------------------------------------------------------------
def bert_freeze_forward(params, input_ids, attention_mask, token_type_ids,
                        *, n_heads):
    B, S = input_ids.shape
    H = params["word_emb"].shape[1]
    BS = B * S

    # embeddings: bf16 table gathers stay in XLA; sum + LayerNorm fused in Pallas
    we = params["word_emb"][input_ids]            # [B,S,H] bf16
    te = params["type_emb"][token_type_ids]       # [B,S,H] bf16
    pe = params["pos_emb"][:S]                    # [S,H]   bf16
    x = pallas_embedding_layernorm(we, te, pe, params["emb_ln_g"],
                                   params["emb_ln_b"]).reshape(BS, H)

    # tiny additive attention mask [B,1,S]; broadcast happens inside the kernel
    addmask = ((1.0 - attention_mask.astype(jnp.float32)) * -10000.0
               ).reshape(B, 1, S)

    for lyr in params["layers"]:
        # fused QKV projection (weight-stationary: one HBM read of W_qkv)
        # TODO(synk): optionally fold this projection into the attention kernel
        # (emit_pipeline over K) so the [BS,3H] slab never round-trips HBM.
        qkv = pallas_linear(x, lyr["w_qkv"], lyr["b_qkv"])          # [BS,3H]
        ctx = pallas_attention(qkv.reshape(B, S, 3 * H), addmask,
                               n_heads=n_heads).reshape(BS, H)

        # attention-output projection fused with residual-add + LayerNorm
        x1 = pallas_linear_add_ln(ctx, lyr["wo"], lyr["bo"], x,
                                  lyr["ln1_g"], lyr["ln1_b"])

        # feed-forward: H -> 4H with GELU, then 4H -> H fused with add + LN
        ffn = pallas_linear(x1, lyr["wi"], lyr["bi"], activation="gelu")
        x = pallas_linear_add_ln(ffn, lyr["wo2"], lyr["bo2"], x1,
                                 lyr["ln2_g"], lyr["ln2_b"])

    sequence_output = x.reshape(B, S, H)          # last_hidden_state (bf16)
    cls = sequence_output[:, 0, :]                # [B, H]

    # pooler + trainable heads run in f32 (matches the PyTorch module)
    pooled_output = pallas_linear(cls, params["pooler_w"], params["pooler_b"],
                                  activation="tanh", out_dtype=jnp.float32,
                                  compute_dtype=jnp.float32)

    # the two pooled-output heads share one lane-padded matmul
    mi = params["ic_w"].shape[1]
    head_w = jnp.concatenate([params["ic_w"], params["icls_w"]], axis=1)
    head_b = jnp.concatenate([params["ic_b"], params["icls_b"]])
    pooled_logits = pallas_head_linear(pooled_output, head_w, head_b)
    intent_count_logits = pooled_logits[:, :mi]
    intent_logits = pooled_logits[:, mi:]

    slot_logits = pallas_head_linear(x, params["slot_w"], params["slot_b"]
                                     ).reshape(B, S, -1)

    return intent_count_logits, intent_logits, slot_logits


# ----------------------------------------------------------------------------
# Demo
# ----------------------------------------------------------------------------
if __name__ == "__main__":
    # Small BERT-like config
    B, S = 2, 8
    VOCAB, MAX_POS, TYPE_VOCAB = 100, 16, 2
    HIDDEN, N_LAYERS, N_HEADS, INTERMEDIATE = 32, 2, 2, 64
    NUM_INTENT_LABELS, NUM_SLOT_LABELS, MAX_INTENTS = 5, 7, 3

    key = jax.random.PRNGKey(0)
    kp, kid, ktt = jax.random.split(key, 3)

    params = init_params(
        kp, vocab=VOCAB, max_pos=MAX_POS, type_vocab=TYPE_VOCAB, hidden=HIDDEN,
        n_layers=N_LAYERS, n_heads=N_HEADS, intermediate=INTERMEDIATE,
        num_intent_labels=NUM_INTENT_LABELS, num_slot_labels=NUM_SLOT_LABELS,
        max_intents=MAX_INTENTS)

    input_ids = jax.random.randint(kid, (B, S), 0, VOCAB, dtype=jnp.int32)
    token_type_ids = jax.random.randint(ktt, (B, S), 0, TYPE_VOCAB,
                                        dtype=jnp.int32)
    attention_mask = jnp.ones((B, S), dtype=jnp.int32).at[1, 6:].set(0)

    intent_count_logits, intent_logits, slot_logits = bert_freeze_forward(
        params, input_ids, attention_mask, token_type_ids, n_heads=N_HEADS)

    jax.block_until_ready((intent_count_logits, intent_logits, slot_logits))

    assert intent_count_logits.shape == (B, MAX_INTENTS)
    assert intent_logits.shape == (B, NUM_INTENT_LABELS)
    assert slot_logits.shape == (B, S, NUM_SLOT_LABELS)
    assert all(jnp.isfinite(t).all() for t in
               (intent_count_logits, intent_logits, slot_logits))
    print("KERNEL_OK")
</pallas_src>

<mosaic_0001>
module attributes {stable_mosaic.version = 11 : i64} {
  func.func @_emb_ln_kernel(%arg0: i32, %arg1: i32, %arg2: memref<1x8x32xbf16, #tpu.memory_space<vmem>>, %arg3: memref<1x8x32xbf16, #tpu.memory_space<vmem>>, %arg4: memref<8x32xbf16, #tpu.memory_space<vmem>>, %arg5: memref<1x32xf32, #tpu.memory_space<vmem>>, %arg6: memref<1x32xf32, #tpu.memory_space<vmem>>, %arg7: memref<1x8x32xbf16, #tpu.memory_space<vmem>>) attributes {dimension_semantics = [#tpu.dimension_semantics<parallel>, #tpu.dimension_semantics<parallel>], iteration_bounds = array<i64: 2, 1>, scalar_prefetch = 0 : i64, scratch_operands = 0 : i64, tpu.core_type = #tpu.core_type<tc>, window_params = [{transform_indices = @transform_0, window_bounds = array<i64: 1, 8, 32>}, {transform_indices = @transform_1, window_bounds = array<i64: 1, 8, 32>}, {transform_indices = @transform_2, window_bounds = array<i64: 8, 32>}, {pipeline_mode = #tpu.pipeline_mode<synchronous>, transform_indices = @transform_3, window_bounds = array<i64: 1, 32>}, {pipeline_mode = #tpu.pipeline_mode<synchronous>, transform_indices = @transform_4, window_bounds = array<i64: 1, 32>}, {transform_indices = @transform_5, window_bounds = array<i64: 1, 8, 32>}]} {
    %c0 = arith.constant 0 : index
    %c0_0 = arith.constant 0 : index
    %c0_1 = arith.constant 0 : index
    %0 = vector.load %arg2[%c0, %c0_0, %c0_1] : memref<1x8x32xbf16, #tpu.memory_space<vmem>>, vector<1x8x32xbf16>
    %1 = vector.shape_cast %0 : vector<1x8x32xbf16> to vector<8x32xbf16>
    %2 = arith.extf %1 : vector<8x32xbf16> to vector<8x32xf32>
    %c0_2 = arith.constant 0 : index
    %c0_3 = arith.constant 0 : index
    %c0_4 = arith.constant 0 : index
    %3 = vector.load %arg3[%c0_2, %c0_3, %c0_4] : memref<1x8x32xbf16, #tpu.memory_space<vmem>>, vector<1x8x32xbf16>
    %4 = vector.shape_cast %3 : vector<1x8x32xbf16> to vector<8x32xbf16>
    %5 = arith.extf %4 : vector<8x32xbf16> to vector<8x32xf32>
    %6 = arith.addf %2, %5 : vector<8x32xf32>
    %c0_5 = arith.constant 0 : index
    %c0_6 = arith.constant 0 : index
    %7 = vector.load %arg4[%c0_5, %c0_6] : memref<8x32xbf16, #tpu.memory_space<vmem>>, vector<8x32xbf16>
    %8 = arith.extf %7 : vector<8x32xbf16> to vector<8x32xf32>
    %9 = arith.addf %6, %8 : vector<8x32xf32>
    %cst = arith.constant dense<0.000000e+00> : vector<8xf32>
    %10 = vector.multi_reduction <add>, %9, %cst [1] : vector<8x32xf32> to vector<8xf32>
    %11 = vector.shape_cast %10 : vector<8xf32> to vector<8x1xf32>
    %cst_7 = arith.constant 3.200000e+01 : f32
    %12 = vector.broadcast %cst_7 : f32 to vector<8x1xf32>
    %13 = arith.divf %11, %12 : vector<8x1xf32>
    %14 = vector.broadcast %13 : vector<8x1xf32> to vector<8x32xf32>
    %15 = arith.subf %9, %14 : vector<8x32xf32>
    %16 = arith.mulf %15, %15 : vector<8x32xf32>
    %cst_8 = arith.constant dense<0.000000e+00> : vector<8xf32>
    %17 = vector.multi_reduction <add>, %16, %cst_8 [1] : vector<8x32xf32> to vector<8xf32>
    %18 = vector.shape_cast %17 : vector<8xf32> to vector<8x1xf32>
    %cst_9 = arith.constant 3.200000e+01 : f32
    %19 = vector.broadcast %cst_9 : f32 to vector<8x1xf32>
    %20 = arith.divf %18, %19 : vector<8x1xf32>
    %cst_10 = arith.constant 9.99999996E-13 : f32
    %21 = vector.broadcast %cst_10 : f32 to vector<8x1xf32>
    %22 = arith.addf %20, %21 : vector<8x1xf32>
    %23 = math.rsqrt %22 : vector<8x1xf32>
    %24 = vector.broadcast %23 : vector<8x1xf32> to vector<8x32xf32>
    %25 = arith.mulf %15, %24 : vector<8x32xf32>
    %c0_11 = arith.constant 0 : index
    %c0_12 = arith.constant 0 : index
    %26 = vector.load %arg5[%c0_11, %c0_12] : memref<1x32xf32, #tpu.memory_space<vmem>>, vector<1x32xf32>
    %27 = vector.broadcast %26 : vector<1x32xf32> to vector<8x32xf32>
    %28 = arith.mulf %25, %27 : vector<8x32xf32>
    %c0_13 = arith.constant 0 : index
    %c0_14 = arith.constant 0 : index
    %29 = vector.load %arg6[%c0_13, %c0_14] : memref<1x32xf32, #tpu.memory_space<vmem>>, vector<1x32xf32>
    %30 = vector.broadcast %29 : vector<1x32xf32> to vector<8x32xf32>
    %31 = arith.addf %28, %30 : vector<8x32xf32>
    %32 = arith.truncf %31 : vector<8x32xf32> to vector<8x32xbf16>
    %c0_15 = arith.constant 0 : index
    %c0_16 = arith.constant 0 : index
    %c0_17 = arith.constant 0 : index
    %33 = vector.load %arg7[%c0_15, %c0_16, %c0_17] : memref<1x8x32xbf16, #tpu.memory_space<vmem>>, vector<1x8x32xbf16>
    %34 = vector.shape_cast %33 : vector<1x8x32xbf16> to vector<8x32xbf16>
    %35 = vector.shape_cast %32 : vector<8x32xbf16> to vector<1x8x32xbf16>
    tpu.vector_store %arg7[%c0_15, %c0_16, %c0_17], %35 {strides = array<i32>} : memref<1x8x32xbf16, #tpu.memory_space<vmem>>, vector<1x8x32xbf16>,
    return
  }
  func.func @transform_0(%arg0: i32, %arg1: i32) -> (i32, i32, i32) {
    %c0_i32 = arith.constant 0 : i32
    %c0_i32_0 = arith.constant 0 : i32
    return %arg0, %arg1, %c0_i32 : i32, i32, i32
  }
  func.func @transform_1(%arg0: i32, %arg1: i32) -> (i32, i32, i32) {
    %c0_i32 = arith.constant 0 : i32
    %c0_i32_0 = arith.constant 0 : i32
    return %arg0, %arg1, %c0_i32 : i32, i32, i32
  }
  func.func @transform_2(%arg0: i32, %arg1: i32) -> (i32, i32) {
    %c0_i32 = arith.constant 0 : i32
    %c0_i32_0 = arith.constant 0 : i32
    return %arg1, %c0_i32 : i32, i32
  }
  func.func @transform_3(%arg0: i32, %arg1: i32) -> (i32, i32) {
    %c0_i32 = arith.constant 0 : i32
    %c0_i32_0 = arith.constant 0 : i32
    %c0_i32_1 = arith.constant 0 : i32
    return %c0_i32, %c0_i32_0 : i32, i32
  }
  func.func @transform_4(%arg0: i32, %arg1: i32) -> (i32, i32) {
    %c0_i32 = arith.constant 0 : i32
    %c0_i32_0 = arith.constant 0 : i32
    %c0_i32_1 = arith.constant 0 : i32
    return %c0_i32, %c0_i32_0 : i32, i32
  }
  func.func @transform_5(%arg0: i32, %arg1: i32) -> (i32, i32, i32) {
    %c0_i32 = arith.constant 0 : i32
    %c0_i32_0 = arith.constant 0 : i32
    return %arg0, %arg1, %c0_i32 : i32, i32, i32
  }
}

</mosaic_0001>

<bundles_post_ra>
// kernel: tpu_custom_call.1
= control target key start
LH: loop header
LB: loop body
LE: loop exit
PB: predicated region body
PF: predicated region fallthrough
CT: control target
= control target key end

     0   :  { %10 = vsyncpa [#allocation3], 0  ;;  %s993_s0 = inlined_call_operand.hbm [shape: bf16[2,8,32], index: 0, kind: input, shape index: {}]   ;;  %s994_s1 = inlined_call_operand.hbm [shape: bf16[2,8,32], index: 1, kind: input, shape index: {}]   ;;  %s995_s2 = inlined_call_operand.vmem [shape: bf16[8,32], index: 2, kind: input, shape index: {}]   ;;  %s996_s3 = inlined_call_operand.vmem [shape: f32[1,32], index: 3, kind: input, shape index: {}]   ;;  %s997_s4 = inlined_call_operand.vmem [shape: f32[1,32], index: 4, kind: input, shape index: {}]   ;;  %s998_s5 = inlined_call_operand.hbm [shape: bf16[2,8,32], index: 5, kind: output, shape index: {}]  }
   0x1   :  { %12 = vsyncpa [#allocation3 + $0x1], 0 }
   0x2   :  { %13 = vsyncpa [#allocation6], 0 }
   0x3   :  { %15 = vsyncpa [#allocation6 + $0x1], 0 }
   0x4   :  { %16 = vsyncpa [#allocation4], 0 }
   0x5   :  { %18 = vsyncpa [#allocation4 + $0x1], 0  ;;  %s759_s18 = smov 0   ;;  %s761_s19 = smov 0  }
   0x6   :  { %s763_s20 = smov 0   ;;  %s765_s21 = smov 0  }
   0x7   :  { %s767_s22 = smov 0   ;;  %s769_s23 = smov 0  }
   0x8 LB: > { %s490_s24 = sadd.s32 4294967295, %s724_s23   ;;  %s491_s25 = sadd.s32 4294967294, %s724_s23   ;;  %s724_s23 = sphi %s769_s23, %s24_s23   ;;  %s720_s22 = sphi %s767_s22, %s1018_s22   ;;  %s716_s21 = sphi %s765_s21, %s1017_s21   ;;  %s712_s20 = sphi %s763_s20, %s1016_s20   ;;  %s708_s19 = sphi %s761_s19, %s1015_s19   ;;  %s704_s18 = sphi %s759_s18, %s1014_s18  }
   0x9   : > { %s36_s26 = sadd.s32 1, %s720_s22  ;;  %s45_s27 = sadd.s32 1, %s712_s20 }
   0xa   : > { %p38_p0 = scmp.ge.s32.totalorder %s36_s26, 2  ;;  %p52_p1 = scmp.ne.s32.totalorder %s712_s20, %s708_s19 }
   0xb   : > { %p53_p2 = scmp.eq.s32.totalorder %s724_s23, 0  ;;  %p58_p3 = scmp.ne.s32.totalorder %s708_s19, %s704_s18 }
   0xc   : > { %s1020_s26 = smov (%p38_p0, %s36_s26), 0  ;;  %p59_p5 = scmp.eq.s32.totalorder %s490_s24, 0 }
   0xd   : > { %p800_p4 = por %p53_p2, %p52_p1  ;;  %s40_s29 = ssub.s32 %s720_s22, %s1020_s26 }
   0xe   : > { %p180_p6 = scmp.eq.s32.totalorder %s490_s24, 1  ;;  %p43_p7 = scmp.eq.s32.totalorder %s40_s29, 0 }
   0xf   : > { %p806_p8 = por %p59_p5, %p58_p3  ;;  %p186_p10 = scmp.eq.s32.totalorder %s491_s25, 1 }
  0x10   : > { %p810_p9 = por %p180_p6, %p52_p1  ;;  %p526_p13 = scmp.lt.s32.totalorder %s724_s23, 2 }
  0x11   : > { %s1002_s30 = scalar_select %p806_p8, 1, 0 }
  0x12   : > { %s1003_s6 = scalar_select %p810_p9, 1, 0 }
  0x13   : > { %s815_s7 = scalar_select %p43_p7, %s712_s20, %s45_s27  }
  0x14   : > { %p817_p11 = por %p186_p10, %p58_p3  ;;  %s824_s9 = sand.u32 1, %s712_s20  }
  0x15   : > { %s495_s10 = sshll.u32 %s824_s9, 2  ;;  %s496_s11 = sshll.u32 %s720_s22, 6 }
  0x16   : > { %s1004_s8 = scalar_select %p817_p11, 1, 0 }
  0x17   : > { %s833_s14 = scalar_lea.hbm %s993_s0, %s496_s11  ;;  %s223_s15 = scalar_lea.vmem [#allocation2], %s495_s10 }
  0x18   : > { %s231_s16 = sshll.u32 %s223_s15, 4  ;;  %p841_p0 = pnand %p526_p13, %p800_p4  ;;  %s837_s16 = int_to_ptr.vmem [resolvable:$true] %s231_s16 }
  0x19   : > { %s220_s24 = scalar_lea.sflag [#allocation3], %s824_s9  ;;  %s578_s25 = scalar_lea.hbm %s833_s14, 64 }
  0x1a   : > { %p579_p3 = scmp.ne.s32.totalorder %s833_s14, %s578_s25  ;;  %p580_p5 = pneg %p841_p0 }
  0x1b   : > { %s583_s28 = scalar_lea.hbm %s993_s0, 128  ;;  %p584_p4 = scmp.lt.u32.totalorder %s833_s14, %s993_s0 }
  0x1c   : > { %p581_p6 = pnand %p580_p5, %p579_p3  ;;  %p585_p10 = scmp.lt.u32.totalorder %s583_s28, %s578_s25 }
  0x1d   : > { %p587_p12 = scmp.lt.u32.totalorder %s578_s25, %s833_s14 }
  0x1e   : > { %p582_p7 = pneg %p581_p6  ;;  %p586_p13 = por %p585_p10, %p584_p4 }
  0x20   : > { %p588_p1 = por %p587_p12, %p586_p13 }
  0x22   : > { %p589_p2 = pnand %p588_p1, %p582_p7 }
  0x24   : > { %592 = shalt.err (!%p589_p2)
}
  0x25   : > { %s593_s15 = scalar_lea.vmem %s837_s16, 64  ;;  %s726_s27 = smov [#allocation2]  }
  0x26   : > { %p594_p3 = scmp.ne.s32.totalorder %s837_s16, %s593_s15  ;;  %s598_s29 = sshll.u32 %s726_s27, 4  ;;  %s599_s29 = int_to_ptr.vmem [resolvable:$false] %s598_s29 }
  0x27   : > { %s600_s12 = scalar_lea.vmem %s599_s29, 128  ;;  %p601_p9 = scmp.lt.s32.totalorder %s837_s16, %s599_s29 }
  0x28   : > { %p596_p6 = pnand %p594_p3, %p580_p5  ;;  %p602_p4 = scmp.lt.s32.totalorder %s600_s12, %s593_s15 }
  0x2a   : > { %p597_p11 = pneg %p596_p6  ;;  %p603_p10 = por %p602_p4, %p601_p9 }
  0x2c   : > { %p604_p12 = pnand %p603_p10, %p597_p11 }
  0x2e   : > { %607 = shalt.err (!%p604_p12)
}
  0x2f   : > { %518 = dma.hbm_to_vmem [thread:$0]  (!%p841_p0), %s833_s14, 64, %s837_s16, %s220_s24  }
  0x30   : > { %p1006_p1 = scmp.lt.s32.totalorder %s724_s23, 3  ;;  %p1007_p2 = scmp.ge.s32.totalorder %s724_s23, 1 }
  0x31   : > { %s886_s15 = scalar_lea.hbm %s994_s1, %s496_s11  ;;  %s242_s27 = scalar_lea.vmem [#allocation5], %s495_s10 }
  0x32   : > { %p877_p7 = pnand %p1007_p2, %p1006_p1  ;;  %s250_s29 = sshll.u32 %s242_s27, 4  ;;  %s251_s29 = int_to_ptr.vmem [resolvable:$true] %s250_s29 }
  0x33   : > { %s239_s14 = scalar_lea.sflag [#allocation6], %s824_s9  ;;  %s608_s16 = scalar_lea.hbm %s886_s15, 64 }
  0x34   : > { %s1008_s25 = scalar_select %p877_p7, 1, 0 }
  0x35   : > { %p609_p9 = scmp.ne.s32.totalorder %s886_s15, %s608_s16  ;;  %s613_s11 = scalar_lea.hbm %s994_s1, 128 }
  0x36   : > { %p614_p3 = scmp.lt.u32.totalorder %s886_s15, %s994_s1  ;;  %p615_p6 = scmp.lt.u32.totalorder %s613_s11, %s608_s16 }
  0x37   : > { %p611_p11 = pnand %p609_p9, %p580_p5  ;;  %p617_p10 = scmp.lt.u32.totalorder %s608_s16, %s886_s15 }
  0x38   : > { %p616_p4 = por %p615_p6, %p614_p3 }
  0x39   : > { %p612_p13 = pneg %p611_p11 }
  0x3a   : > { %p618_p12 = por %p617_p10, %p616_p4 }
  0x3c   : > { %p619_p1 = pnand %p618_p12, %p612_p13 }
  0x3e   : > { %622 = shalt.err (!%p619_p1)
}
  0x3f   : > { %s623_s9 = scalar_lea.vmem %s251_s29, 64  ;;  %s727_s10 = smov [#allocation5]  }
  0x40   : > { %p624_p2 = scmp.ne.s32.totalorder %s251_s29, %s623_s9  ;;  %s628_s27 = sshll.u32 %s727_s10, 4  ;;  %s629_s27 = int_to_ptr.vmem [resolvable:$false] %s628_s27 }
  0x41   : > { %s630_s24 = scalar_lea.vmem %s629_s27, 128  ;;  %p631_p8 = scmp.lt.s32.totalorder %s251_s29, %s629_s27 }
  0x42   : > { %p626_p9 = pnand %p624_p2, %p580_p5  ;;  %p632_p7 = scmp.lt.s32.totalorder %s630_s24, %s623_s9 }
  0x44   : > { %p627_p11 = pneg %p626_p9  ;;  %p633_p3 = por %p632_p7, %p631_p8 }
  0x46   : > { %p634_p6 = pnand %p633_p3, %p627_p11 }
  0x48   : > { %637 = shalt.err (!%p634_p6)
}
  0x49   : > { %521 = dma.hbm_to_vmem [thread:$0]  (!%p841_p0), %s886_s15, 64, %s251_s29, %s239_s14  }
  0x4a   : > { %p1009_p13 = scmp.ne.s32.totalorder %s1008_s25, 0 }
  0x4b   : > { %s913_s16 = sand.u32 (!%p1009_p13), 1, %s708_s19   ;;  %p1010_p8 = scmp.ne.s32.totalorder (!%p1009_p13), %s1002_s30, 0 }
  0x4c   : > { %259 = sbr.rel (%p1009_p13) target bundleno = 422 (0x1a6), region = 40  ;;  %s916_s12 = sshll.u32 (!%p1009_p13), %s913_s16, 2 }
  0x4d   : > { %s262_s11 = scalar_lea.sflag (!%p1009_p13), [#allocation3], %s913_s16  ;;  %s265_s28 = scalar_lea.vmem (!%p1009_p13), [#allocation2], %s916_s12 }
  0x53   : > { %691 = dma.done.wait (%p1010_p8), %s262_s11, 64  }
  0x54   : > { %693 = vsyncadd (%p1010_p8), %s262_s11, 4294967232  ;;  %s271_s17 = scalar_lea.sflag [#allocation6], %s913_s16  ;;  %s274_s25 = scalar_lea.vmem [#allocation5], %s916_s12 }
  0x55   : > { %695 = dma.done.wait (%p1010_p8), %s271_s17, 64  }
  0x56   : > { %697 = vsyncadd (%p1010_p8), %s271_s17, 4294967232  ;;  %v314_v0 = vld [vmem:[%s265_s28] sm:$0xf]  ;;  %v316_v1 = vld [vmem:[%s274_s25] sm:$0xf]  ;;  %vm322_vm0 = vcmask 261120  }
  0x57   : > { %v319_v2 = vld [vmem:[%s995_s2] sm:$0xf]  ;;  %v315_v3 = vunpack.c.l.bf16 %v314_v0  ;;  %v317_v4 = vunpack.c.l.bf16 %v316_v1  ;;  %s506_s10 = sshll.u32 %s716_s21, 6  ;;  %s309_s27 = scalar_lea.vmem [#allocation7], %s916_s12  ;;  %vm354_vm1 = vcmask 257024  }
  0x58   : > { %v320_v5 = vunpack.c.l.bf16 %v319_v2  ;;  %v503_v18 = vld [vmem:[%s996_s3] ss:$0 sm:$0xff]  ;;  %s371_s24 = sshll.u32 %s309_s27, 4  ;;  %s944_s17 = scalar_lea.hbm %s998_s5, %s506_s10  ;;  %s946_s24 = int_to_ptr.vmem [resolvable:$true] %s371_s24 }
  0x59   : > { %v318_v6 = vadd.f32 %v317_v4, %v315_v3  ;;  %v504_v20 = vld [vmem:[%s997_s4] ss:$0 sm:$0xff]  ;;  %s357_s25 = scalar_lea.sflag [#allocation4], %s913_s16  ;;  %s638_s15 = scalar_lea.vmem %s946_s24, 64 }
  0x5a   : > { %p639_p0 = scmp.ne.s32.totalorder %s946_s24, %s638_s15  ;;  %p1011_p5 = scmp.ne.s32.totalorder %s1003_s6, 0 }
  0x5b   : > { %v321_v7 = vadd.f32 %v320_v5, %v318_v6  ;;  %s728_s21 = smov [#allocation7]  }
  0x5c   : > { %p640_p7 = pnand %p639_p0, %p1011_p5  ;;  %s642_s12 = sshll.u32 %s728_s21, 4  ;;  %s643_s12 = int_to_ptr.vmem [resolvable:$false] %s642_s12 }
  0x5d   : > { %v323_v8 = vsel %vm322_vm0, %v321_v7, 0.0  ;;  %s644_s29 = scalar_lea.vmem %s643_s12, 128  ;;  %p645_p10 = scmp.lt.s32.totalorder %s946_s24, %s643_s12 }
  0x5e   : > { %324 = vadd.xlane.f32.xlu0 %v323_v8  ;;  %p641_p4 = pneg %p640_p7  ;;  %p646_p12 = scmp.lt.s32.totalorder %s644_s29, %s638_s15 }
  0x60   : > { %p647_p1 = por %p646_p12, %p645_p10 }
  0x62   : > { %p648_p2 = pnand %p647_p1, %p641_p4 }
  0xeb   : > { %v325_v9 = vpop.xlane.xlu0 %324 }
  0xec   : > { %v327_v10 = vmul.f32 0.03125, %v325_v9 }
  0xee   : > { %v328_v11 = vsub.f32 %v321_v7, %v327_v10 }
  0xf0   : > { %v329_v12 = vmul.f32 %v328_v11, %v328_v11 }
  0xf2   : > { %v330_v13 = vsel %vm322_vm0, %v329_v12, 0.0 }
  0xf3   : > { %331 = vadd.xlane.f32.xlu0 %v330_v13 }
 0x180   : > { %v332_v14 = vpop.xlane.xlu0 %331 }
 0x181   : > { %v333_v15 = vmul.f32 0.03125, %v332_v14 }
 0x183   : > { %v334_v16 = vadd.f32 1e-12, %v333_v15 }
 0x185   : > { %576 = vrsqrt.f32 %v334_v16 }
 0x18f   : > { %v577_v17 = vpop.eup %576 }
 0x190   : > { %v336_v19 = vmul.f32 %v577_v17, %v328_v11 }
 0x192   : > { %v344_v21 = vmul.f32 %v503_v18, %v336_v19 }
 0x194   : > { %v352_v22 = vadd.f32 %v504_v20, %v344_v21 }
 0x196   : > { %v353_v23 = vpack.c.bf16 %v352_v22, %v352_v22 }
 0x198   : > { %355 = vst.msk [vmem:[%s309_s27] sm:$0xf] %vm354_vm1, %v353_v23 }
 0x199   : > { %651 = shalt.err (!%p648_p2)
}
 0x19a   : > { %s652_s16 = scalar_lea.hbm %s944_s17, 64  ;;  %s656_s13 = scalar_lea.hbm %s998_s5, 128 }
 0x19b   : > { %p653_p9 = scmp.ne.s32.totalorder %s944_s17, %s652_s16  ;;  %p657_p6 = scmp.lt.u32.totalorder %s944_s17, %s998_s5 }
 0x19c   : > { %p658_p13 = scmp.lt.u32.totalorder %s656_s13, %s652_s16  ;;  %p660_p0 = scmp.lt.u32.totalorder %s652_s16, %s944_s17 }
 0x19d   : > { %p654_p11 = pnand %p653_p9, %p1011_p5 }
 0x19e   : > { %p659_p8 = por %p658_p13, %p657_p6 }
 0x19f   : > { %p655_p3 = pneg %p654_p11 }
 0x1a0   : > { %p661_p7 = por %p660_p0, %p659_p8 }
 0x1a2   : > { %p662_p4 = pnand %p661_p7, %p655_p3 }
 0x1a4   : > { %665 = shalt.err (!%p662_p4)
}
 0x1a5   : > { %513 = dma.vmem_to_hbm [thread:$0]  (%p1011_p5), %s946_s24, 64, %s944_s17, %s357_s25  }
 0x1a6 PF: > { %s383_s27 = sand.u32 1, %s704_s18   ;;  %p1012_p10 = scmp.ne.s32.totalorder %s1004_s8, 0 }
 0x1a7   : > { %p1013_p12 = scmp.ge.s32.totalorder %s724_s23, 2  ;;  %s384_s11 = scalar_lea.sflag [#allocation4], %s383_s27 }
 0x1a9   : > { %p523_p1 = pnand %p1013_p12, %p1012_p10 }
 0x1ab   : > { %699 = dma.done.wait (!%p523_p1), %s384_s11, 64  }
 0x1ac   : > { %701 = vsyncadd (!%p523_p1), %s384_s11, 4294967232  ;;  %s24_s23 = sadd.s32 1, %s724_s23   ;;  %s1014_s18 = smov %s708_s19 }
 0x1ad   : > { %p21_p2 = scmp.ge.s32.totalorder %s24_s23, 4   ;;  %s1015_s19 = smov %s712_s20 }
 0x1ae   : > { %s1016_s20 = smov %s815_s7  ;;  %s1017_s21 = smov %s720_s22 }
 0x1af   : > { %s1018_s22 = smov %s1020_s26  ;;  %23 = sbr.rel (!%p21_p2) target bundleno = 8 (0x8), region = 101 }
 0x1b6   :  { %389 = vsyncpa [#allocation3], 1 }
 0x1b7   :  { %391 = vsyncpa [#allocation3 + $0x1], 1 }
 0x1b8   :  { %392 = vsyncpa [#allocation6], 1 }
 0x1b9   :  { %394 = vsyncpa [#allocation6 + $0x1], 1 }
 0x1ba   :  { %395 = vsyncpa [#allocation4], 1 }
 0x1bb   :  { %397 = vsyncpa [#allocation4 + $0x1], 1 }

</bundles_post_ra>
